<compile_context>
chip_gen: v7x
topology: tpu7x:2x2x1
jax: 0.10.0
libtpu: 0.0.40
codegen_flags: <defaults>
</compile_context>

<pallas_src>
import functools

import numpy as np

import jax
import jax.numpy as jnp
from jax import lax
from jax.experimental import pallas as pl
from jax.experimental.pallas import tpu as pltpu


def _round_up(x, m):
    return (x + m - 1) // m * m


def _make_dense_block_kernel(n_iters, CP, C4P, W, lanes):
    """Fused DenseBlock kernel for one lane-chunk (nb images concatenated on lanes)."""

    def kernel(*refs):
        # refs = (x, masks, [w1t, b1, w2f, b2] * n_iters, out, stack, taps)
        x_ref = refs[0]                      # (CP, lanes)  f32 channel-padded input
        masks_ref = refs[1]                  # (9, lanes)   f32 boundary masks
        w_refs = refs[2:2 + 4 * n_iters]
        o_ref = refs[2 + 4 * n_iters]        # (CP, lanes)  f32
        stack_ref = refs[3 + 4 * n_iters]    # (CP*n_iters, lanes) f32 dense-concat stack
        taps_ref = refs[4 + 4 * n_iters]     # (9*C4P, lanes) f32 rolled+masked taps

        # Seed the dense "res" stack; slot 0 is 8-sublane aligned and already
        # channel-padded (pad rows are zero), so this is one plain aligned store.
        stack_ref[0:CP, :] = x_ref[...]

        out = None
        for it in range(n_iters):
            w1t_ref = w_refs[4 * it]         # (C4P, CP*(it+1)) bf16 slot-padded 1x1 weight
            b1_ref = w_refs[4 * it + 1]      # (C4P, 1) f32
            w2f_ref = w_refs[4 * it + 2]     # (CP, 9*C4P) bf16 tap-fused 3x3 weight
            b2_ref = w_refs[4 * it + 3]      # (CP, 1) f32

            # ---- 1x1 bottleneck conv + ReLU: one whole-plane bf16 MXU matmul ----
            xs = stack_ref[0:CP * (it + 1), :].astype(jnp.bfloat16)
            y = jnp.dot(w1t_ref[...], xs,
                        preferred_element_type=jnp.float32)         # (C4P, lanes) f32
            y = jnp.maximum(y + b1_ref[...], 0.0)

            # ---- 3x3 conv (padding=1) + ReLU: ONE deep-K matmul over 9 fused taps ----
            # Build the (9*C4P, lanes) contraction operand: per tap, a lane-rolled
            # copy of y pre-multiplied by its zero-padding boundary mask.
            for dy in range(3):
                for dx in range(3):
                    t = 3 * dy + dx
                    off = (dy - 1) * W + (dx - 1)
                    if off == 0:
                        taps_ref[t * C4P:(t + 1) * C4P, :] = y       # center: no mask
                    else:
                        ys = pltpu.roll(y, shift=(-off) % lanes, axis=1)
                        taps_ref[t * C4P:(t + 1) * C4P, :] = ys * masks_ref[t:t + 1, :]
            z = jnp.dot(w2f_ref[...], taps_ref[...].astype(jnp.bfloat16),
                        preferred_element_type=jnp.float32)          # (CP, lanes) f32
            out = jnp.maximum(z + b2_ref[...], 0.0)

            # res_x.append(x): only needed if a later iteration will read it.
            # Pad rows of `out` are exactly zero (zero-padded w2f rows and b2), so
            # the next slot stays zero-padded with a single aligned full-slot store.
            if it + 1 < n_iters:
                stack_ref[CP * (it + 1):CP * (it + 2), :] = out

        o_ref[...] = out.astype(o_ref.dtype)

    return kernel


@functools.partial(jax.jit, static_argnums=(2,))
def dense_block_forward(x_nchw, params, conv_num):
    """DenseBlock.forward: NCHW in, NCHW out (matches the PyTorch module)."""
    conv_num = tuple(conv_num)
    n_iters = len(conv_num)
    assert n_iters >= 1
    # The module's weight shapes (channels*(i+1)) only line up with the growing
    # concat when conv_num == range(len(conv_num)); same implicit assumption here.
    assert conv_num == tuple(range(n_iters)), conv_num

    N, C, H, W = x_nchw.shape
    HW = H * W
    HWp = _round_up(HW, 128)          # lane-dense spatial axis
    CP = _round_up(C, 8)              # 8-sublane-aligned stack slots
    C4 = 4 * C
    C4P = _round_up(C4, 8)

    # Fold the batch into the lane axis in chunks of `nb` images per grid step,
    # keeping >= 2 "parallel" grid steps when N >= 2 (v7x has two TensorCores).
    if N >= 2 and N % 2 == 0:
        n_steps = 2
    else:
        n_steps = N
    nb = N // n_steps
    lanes = nb * HWp

    # ---- activations in kernel layout: channels on sublanes, (image,pixel) on lanes ----
    x2 = x_nchw.reshape(N, C, HW).astype(jnp.float32)
    if HWp != HW:
        x2 = jnp.pad(x2, ((0, 0), (0, 0), (0, HWp - HW)))
    x2 = jnp.transpose(x2, (1, 0, 2)).reshape(C, N * HWp)
    if CP != C:
        x2 = jnp.pad(x2, ((0, CP - C), (0, 0)))

    # ---- boundary masks for the zero-padded 3x3 conv, one row per tap, tiled per image ----
    hh, ww = np.meshgrid(np.arange(H), np.arange(W), indexing="ij")
    hh = hh.reshape(-1)
    ww = ww.reshape(-1)
    m = np.zeros((9, HWp), np.float32)
    for dy in range(3):
        for dx in range(3):
            valid = ((hh + dy - 1 >= 0) & (hh + dy - 1 < H) &
                     (ww + dx - 1 >= 0) & (ww + dx - 1 < W))
            m[3 * dy + dx, :HW] = valid.astype(np.float32)
    masks = jnp.asarray(np.tile(m, (1, nb)))              # (9, lanes)

    inputs = [x2, masks]
    in_specs = [
        pl.BlockSpec((CP, lanes), lambda g: (0, g)),
        pl.BlockSpec((9, lanes), lambda g: (0, 0)),
    ]

    # ---- weights in kernel layout (bf16 MXU operands, zero-padded to aligned slots) ----
    for it in range(n_iters):
        p = params[it]
        cinp = CP * (it + 1)
        # 1x1 weight (C4, C*(it+1)) -> (C4P, CP*(it+1)): regroup columns into
        # 8-aligned CP-wide slots matching the VMEM stack layout; pad with zeros.
        w1 = p["w1t"].reshape(C4, it + 1, C)
        w1 = jnp.pad(w1, ((0, C4P - C4), (0, 0), (0, CP - C)))
        w1 = w1.reshape(C4P, cinp).astype(jnp.bfloat16)
        b1 = jnp.pad(p["b1"], ((0, C4P - C4), (0, 0))).astype(jnp.float32)
        # 3x3 weight (9, C, C4) -> tap-fused (CP, 9*C4P), column blocks per tap.
        w2 = jnp.pad(p["w2t"], ((0, 0), (0, CP - C), (0, C4P - C4)))
        w2 = jnp.transpose(w2, (1, 0, 2)).reshape(CP, 9 * C4P).astype(jnp.bfloat16)
        b2 = jnp.pad(p["b2"], ((0, CP - C), (0, 0))).astype(jnp.float32)

        inputs += [w1, b1, w2, b2]
        in_specs += [
            pl.BlockSpec((C4P, cinp), lambda g: (0, 0)),
            pl.BlockSpec((C4P, 1), lambda g: (0, 0)),
            pl.BlockSpec((CP, 9 * C4P), lambda g: (0, 0)),
            pl.BlockSpec((CP, 1), lambda g: (0, 0)),
        ]

    kernel = _make_dense_block_kernel(n_iters, CP, C4P, W, lanes)
    out2 = pl.pallas_call(
        kernel,
        out_shape=jax.ShapeDtypeStruct((CP, N * HWp), jnp.float32),
        grid_spec=pltpu.PrefetchScalarGridSpec(
            num_scalar_prefetch=0,
            grid=(n_steps,),
            in_specs=in_specs,
            out_specs=pl.BlockSpec((CP, lanes), lambda g: (0, g)),
            scratch_shapes=[
                pltpu.VMEM((CP * n_iters, lanes), jnp.float32),   # dense-concat stack
                pltpu.VMEM((9 * C4P, lanes), jnp.float32),        # fused-tap buffer
            ],
        ),
        compiler_params=pltpu.CompilerParams(
            dimension_semantics=("parallel",)),
        # NOTE: at realistic UNet feature-map sizes add a spatial lane-chunk grid
        # axis (with a +/-W halo) and set vmem_limit_bytes so the resident stack +
        # tap buffer fit v7x's 64 MiB VMEM; at these sizes the defaults are ample.
    )(*inputs)

    out = out2[:C].reshape(C, N, HWp)[:, :, :HW]
    out = jnp.transpose(out, (1, 0, 2)).reshape(N, C, H, W)
    return out.astype(x_nchw.dtype)


def init_dense_block_params(key, channels, conv_num):
    """Deterministic synthetic parameters in the module's natural layout.

    w1t: (4C, Cin)      == Conv2d(Cin, 4C, 1).weight[:, :, 0, 0]
    b1 : (4C, 1)
    w2t: (9, C, 4C)     tap-major 3x3 weight, w2t[3*dy+dx] == weight[:, :, dy, dx]
    b2 : (C, 1)
    """
    C4 = channels * 4
    params = []
    for i in conv_num:
        cin = channels * (i + 1)
        k1, k2, k3, k4, key = jax.random.split(key, 5)
        params.append(dict(
            w1t=jax.random.normal(k1, (C4, cin), jnp.float32) / jnp.sqrt(cin),
            b1=jax.random.normal(k2, (C4, 1), jnp.float32) * 0.01,
            w2t=jax.random.normal(k3, (9, channels, C4), jnp.float32)
                / jnp.sqrt(9.0 * C4),
            b2=jax.random.normal(k4, (channels, 1), jnp.float32) * 0.01,
        ))
    return params


def _reference_forward(x, params, conv_num):
    """Pure-JAX f32 reference (lax.conv, NCHW) used only to validate the kernel."""
    res = [x]
    out = x
    for it, _ in enumerate(conv_num):
        p = params[it]
        inputs = jnp.concatenate(res, axis=1)
        w1 = p["w1t"][:, :, None, None]                      # OIHW (C4, Cin, 1, 1)
        y = lax.conv_general_dilated(
            inputs, w1, (1, 1), "SAME",
            dimension_numbers=("NCHW", "OIHW", "NCHW"))
        y = jnp.maximum(y + p["b1"].reshape(1, -1, 1, 1), 0.0)
        cout, c4 = p["w2t"].shape[1], p["w2t"].shape[2]
        w2 = jnp.transpose(p["w2t"].reshape(3, 3, cout, c4), (2, 3, 0, 1))  # OIHW
        z = lax.conv_general_dilated(
            y, w2, (1, 1), "SAME",
            dimension_numbers=("NCHW", "OIHW", "NCHW"))
        out = jnp.maximum(z + p["b2"].reshape(1, -1, 1, 1), 0.0)
        res.append(out)
    return out


if __name__ == "__main__":
    channels = 4
    conv_num = tuple(range(2))       # DenseBlock(channels=4, conv_num=range(2), '2d')
    N, H, W = 2, 16, 16

    key = jax.random.PRNGKey(0)
    kx, kp = jax.random.split(key)
    x = jax.random.normal(kx, (N, channels, H, W), jnp.float32)   # NCHW like PyTorch
    params = init_dense_block_params(kp, channels, conv_num)

    out = dense_block_forward(x, params, conv_num)
    out = jax.block_until_ready(out)

    assert out.shape == (N, channels, H, W), out.shape
    ref = _reference_forward(x, params, conv_num)
    err = float(jnp.max(jnp.abs(out - ref)))
    # bf16 MXU operands (f32 accumulation) -> relaxed tolerance vs the f32 reference.
    assert jnp.allclose(out, ref, atol=3e-2, rtol=3e-2), err

    print("KERNEL_OK")
</pallas_src>

<mosaic_0001>
module attributes {stable_mosaic.version = 11 : i64} {
  func.func @kernel(%arg0: i32, %arg1: memref<8x256xf32, #tpu.memory_space<vmem>>, %arg2: memref<9x256xf32, #tpu.memory_space<vmem>>, %arg3: memref<16x8xbf16, #tpu.memory_space<vmem>>, %arg4: memref<16x1xf32, #tpu.memory_space<vmem>>, %arg5: memref<8x144xbf16, #tpu.memory_space<vmem>>, %arg6: memref<8x1xf32, #tpu.memory_space<vmem>>, %arg7: memref<16x16xbf16, #tpu.memory_space<vmem>>, %arg8: memref<16x1xf32, #tpu.memory_space<vmem>>, %arg9: memref<8x144xbf16, #tpu.memory_space<vmem>>, %arg10: memref<8x1xf32, #tpu.memory_space<vmem>>, %arg11: memref<8x256xf32, #tpu.memory_space<vmem>>, %arg12: memref<16x256xf32, #tpu.memory_space<vmem>>, %arg13: memref<144x256xf32, #tpu.memory_space<vmem>>) attributes {dimension_semantics = [#tpu.dimension_semantics<parallel>], iteration_bounds = array<i64: 2>, scalar_prefetch = 0 : i64, scratch_operands = 2 : i64, tpu.core_type = #tpu.core_type<tc>, window_params = [{transform_indices = @transform_0, window_bounds = array<i64: 8, 256>}, {pipeline_mode = #tpu.pipeline_mode<synchronous>, transform_indices = @transform_1, window_bounds = array<i64: 9, 256>}, {pipeline_mode = #tpu.pipeline_mode<synchronous>, transform_indices = @transform_2, window_bounds = array<i64: 16, 8>}, {pipeline_mode = #tpu.pipeline_mode<synchronous>, transform_indices = @transform_3, window_bounds = array<i64: 16, 1>}, {pipeline_mode = #tpu.pipeline_mode<synchronous>, transform_indices = @transform_4, window_bounds = array<i64: 8, 144>}, {pipeline_mode = #tpu.pipeline_mode<synchronous>, transform_indices = @transform_5, window_bounds = array<i64: 8, 1>}, {pipeline_mode = #tpu.pipeline_mode<synchronous>, transform_indices = @transform_6, window_bounds = array<i64: 16, 16>}, {pipeline_mode = #tpu.pipeline_mode<synchronous>, transform_indices = @transform_7, window_bounds = array<i64: 16, 1>}, {pipeline_mode = #tpu.pipeline_mode<synchronous>, transform_indices = @transform_8, window_bounds = array<i64: 8, 144>}, {pipeline_mode = #tpu.pipeline_mode<synchronous>, transform_indices = @transform_9, window_bounds = array<i64: 8, 1>}, {transform_indices = @transform_10, window_bounds = array<i64: 8, 256>}]} {
    %c0 = arith.constant 0 : index
    %c0_0 = arith.constant 0 : index
    %0 = vector.load %arg1[%c0, %c0_0] : memref<8x256xf32, #tpu.memory_space<vmem>>, vector<8x256xf32>
    %c0_1 = arith.constant 0 : index
    %c0_2 = arith.constant 0 : index
    %1 = vector.load %arg12[%c0_1, %c0_2] : memref<16x256xf32, #tpu.memory_space<vmem>>, vector<8x256xf32>
    tpu.vector_store %arg12[%c0_1, %c0_2], %0 {strides = array<i32>} : memref<16x256xf32, #tpu.memory_space<vmem>>, vector<8x256xf32>,
    %c0_3 = arith.constant 0 : index
    %c0_4 = arith.constant 0 : index
    %2 = vector.load %arg12[%c0_3, %c0_4] : memref<16x256xf32, #tpu.memory_space<vmem>>, vector<8x256xf32>
    %3 = arith.truncf %2 : vector<8x256xf32> to vector<8x256xbf16>
    %c0_5 = arith.constant 0 : index
    %c0_6 = arith.constant 0 : index
    %4 = vector.load %arg3[%c0_5, %c0_6] : memref<16x8xbf16, #tpu.memory_space<vmem>>, vector<16x8xbf16>
    %cst = arith.constant dense<0.000000e+00> : vector<16x256xf32>
    %5 = tpu.matmul %4, %3, %cst {dimension_numbers = #tpu.dot_dimension_numbers<[1], [0], [0], [1], [0, 0, 1, 1], [], []>} : vector<16x8xbf16>, vector<8x256xbf16>, vector<16x256xf32> -> vector<16x256xf32>
    %c0_7 = arith.constant 0 : index
    %c0_8 = arith.constant 0 : index
    %6 = vector.load %arg4[%c0_7, %c0_8] : memref<16x1xf32, #tpu.memory_space<vmem>>, vector<16x1xf32>
    %7 = vector.broadcast %6 : vector<16x1xf32> to vector<16x256xf32>
    %8 = arith.addf %5, %7 : vector<16x256xf32>
    %cst_9 = arith.constant 0.000000e+00 : f32
    %9 = vector.broadcast %cst_9 : f32 to vector<16x256xf32>
    %10 = arith.maximumf %8, %9 : vector<16x256xf32>
    %c17_i32 = arith.constant 17 : i32
    %11 = tpu.dynamic_rotate %10 by %c17_i32 dim 1 : vector<16x256xf32>, i32 -> vector<16x256xf32>
    %c0_10 = arith.constant 0 : index
    %c0_11 = arith.constant 0 : index
    %12 = vector.load %arg2[%c0_10, %c0_11] : memref<9x256xf32, #tpu.memory_space<vmem>>, vector<1x256xf32>
    %13 = vector.broadcast %12 : vector<1x256xf32> to vector<16x256xf32>
    %14 = arith.mulf %11, %13 : vector<16x256xf32>
    %c0_12 = arith.constant 0 : index
    %c0_13 = arith.constant 0 : index
    %15 = vector.load %arg13[%c0_12, %c0_13] : memref<144x256xf32, #tpu.memory_space<vmem>>, vector<16x256xf32>
    tpu.vector_store %arg13[%c0_12, %c0_13], %14 {strides = array<i32>} : memref<144x256xf32, #tpu.memory_space<vmem>>, vector<16x256xf32>,
    %c16_i32 = arith.constant 16 : i32
    %16 = tpu.dynamic_rotate %10 by %c16_i32 dim 1 : vector<16x256xf32>, i32 -> vector<16x256xf32>
    %c1 = arith.constant 1 : index
    %c0_14 = arith.constant 0 : index
    %17 = vector.load %arg2[%c1, %c0_14] : memref<9x256xf32, #tpu.memory_space<vmem>>, vector<1x256xf32>
    %18 = vector.broadcast %17 : vector<1x256xf32> to vector<16x256xf32>
    %19 = arith.mulf %16, %18 : vector<16x256xf32>
    %c16 = arith.constant 16 : index
    %c0_15 = arith.constant 0 : index
    %20 = vector.load %arg13[%c16, %c0_15] : memref<144x256xf32, #tpu.memory_space<vmem>>, vector<16x256xf32>
    tpu.vector_store %arg13[%c16, %c0_15], %19 {strides = array<i32>} : memref<144x256xf32, #tpu.memory_space<vmem>>, vector<16x256xf32>,
    %c15_i32 = arith.constant 15 : i32
    %21 = tpu.dynamic_rotate %10 by %c15_i32 dim 1 : vector<16x256xf32>, i32 -> vector<16x256xf32>
    %c2 = arith.constant 2 : index
    %c0_16 = arith.constant 0 : index
    %22 = vector.load %arg2[%c2, %c0_16] : memref<9x256xf32, #tpu.memory_space<vmem>>, vector<1x256xf32>
    %23 = vector.broadcast %22 : vector<1x256xf32> to vector<16x256xf32>
    %24 = arith.mulf %21, %23 : vector<16x256xf32>
    %c32 = arith.constant 32 : index
    %c0_17 = arith.constant 0 : index
    %25 = vector.load %arg13[%c32, %c0_17] : memref<144x256xf32, #tpu.memory_space<vmem>>, vector<16x256xf32>
    tpu.vector_store %arg13[%c32, %c0_17], %24 {strides = array<i32>} : memref<144x256xf32, #tpu.memory_space<vmem>>, vector<16x256xf32>,
    %c1_i32 = arith.constant 1 : i32
    %26 = tpu.dynamic_rotate %10 by %c1_i32 dim 1 : vector<16x256xf32>, i32 -> vector<16x256xf32>
    %c3 = arith.constant 3 : index
    %c0_18 = arith.constant 0 : index
    %27 = vector.load %arg2[%c3, %c0_18] : memref<9x256xf32, #tpu.memory_space<vmem>>, vector<1x256xf32>
    %28 = vector.broadcast %27 : vector<1x256xf32> to vector<16x256xf32>
    %29 = arith.mulf %26, %28 : vector<16x256xf32>
    %c48 = arith.constant 48 : index
    %c0_19 = arith.constant 0 : index
    %30 = vector.load %arg13[%c48, %c0_19] : memref<144x256xf32, #tpu.memory_space<vmem>>, vector<16x256xf32>
    tpu.vector_store %arg13[%c48, %c0_19], %29 {strides = array<i32>} : memref<144x256xf32, #tpu.memory_space<vmem>>, vector<16x256xf32>,
    %c64 = arith.constant 64 : index
    %c0_20 = arith.constant 0 : index
    %31 = vector.load %arg13[%c64, %c0_20] : memref<144x256xf32, #tpu.memory_space<vmem>>, vector<16x256xf32>
    tpu.vector_store %arg13[%c64, %c0_20], %10 {strides = array<i32>} : memref<144x256xf32, #tpu.memory_space<vmem>>, vector<16x256xf32>,
    %c255_i32 = arith.constant 255 : i32
    %32 = tpu.dynamic_rotate %10 by %c255_i32 dim 1 : vector<16x256xf32>, i32 -> vector<16x256xf32>
    %c5 = arith.constant 5 : index
    %c0_21 = arith.constant 0 : index
    %33 = vector.load %arg2[%c5, %c0_21] : memref<9x256xf32, #tpu.memory_space<vmem>>, vector<1x256xf32>
    %34 = vector.broadcast %33 : vector<1x256xf32> to vector<16x256xf32>
    %35 = arith.mulf %32, %34 : vector<16x256xf32>
    %c80 = arith.constant 80 : index
    %c0_22 = arith.constant 0 : index
    %36 = vector.load %arg13[%c80, %c0_22] : memref<144x256xf32, #tpu.memory_space<vmem>>, vector<16x256xf32>
    tpu.vector_store %arg13[%c80, %c0_22], %35 {strides = array<i32>} : memref<144x256xf32, #tpu.memory_space<vmem>>, vector<16x256xf32>,
    %c241_i32 = arith.constant 241 : i32
    %37 = tpu.dynamic_rotate %10 by %c241_i32 dim 1 : vector<16x256xf32>, i32 -> vector<16x256xf32>
    %c6 = arith.constant 6 : index
    %c0_23 = arith.constant 0 : index
    %38 = vector.load %arg2[%c6, %c0_23] : memref<9x256xf32, #tpu.memory_space<vmem>>, vector<1x256xf32>
    %39 = vector.broadcast %38 : vector<1x256xf32> to vector<16x256xf32>
    %40 = arith.mulf %37, %39 : vector<16x256xf32>
    %c96 = arith.constant 96 : index
    %c0_24 = arith.constant 0 : index
    %41 = vector.load %arg13[%c96, %c0_24] : memref<144x256xf32, #tpu.memory_space<vmem>>, vector<16x256xf32>
    tpu.vector_store %arg13[%c96, %c0_24], %40 {strides = array<i32>} : memref<144x256xf32, #tpu.memory_space<vmem>>, vector<16x256xf32>,
    %c240_i32 = arith.constant 240 : i32
    %42 = tpu.dynamic_rotate %10 by %c240_i32 dim 1 : vector<16x256xf32>, i32 -> vector<16x256xf32>
    %c7 = arith.constant 7 : index
    %c0_25 = arith.constant 0 : index
    %43 = vector.load %arg2[%c7, %c0_25] : memref<9x256xf32, #tpu.memory_space<vmem>>, vector<1x256xf32>
    %44 = vector.broadcast %43 : vector<1x256xf32> to vector<16x256xf32>
    %45 = arith.mulf %42, %44 : vector<16x256xf32>
    %c112 = arith.constant 112 : index
    %c0_26 = arith.constant 0 : index
    %46 = vector.load %arg13[%c112, %c0_26] : memref<144x256xf32, #tpu.memory_space<vmem>>, vector<16x256xf32>
    tpu.vector_store %arg13[%c112, %c0_26], %45 {strides = array<i32>} : memref<144x256xf32, #tpu.memory_space<vmem>>, vector<16x256xf32>,
    %c239_i32 = arith.constant 239 : i32
    %47 = tpu.dynamic_rotate %10 by %c239_i32 dim 1 : vector<16x256xf32>, i32 -> vector<16x256xf32>
    %c8 = arith.constant 8 : index
    %c0_27 = arith.constant 0 : index
    %48 = vector.load %arg2[%c8, %c0_27] : memref<9x256xf32, #tpu.memory_space<vmem>>, vector<1x256xf32>
    %49 = vector.broadcast %48 : vector<1x256xf32> to vector<16x256xf32>
    %50 = arith.mulf %47, %49 : vector<16x256xf32>
    %c128 = arith.constant 128 : index
    %c0_28 = arith.constant 0 : index
    %51 = vector.load %arg13[%c128, %c0_28] : memref<144x256xf32, #tpu.memory_space<vmem>>, vector<16x256xf32>
    tpu.vector_store %arg13[%c128, %c0_28], %50 {strides = array<i32>} : memref<144x256xf32, #tpu.memory_space<vmem>>, vector<16x256xf32>,
    %c0_29 = arith.constant 0 : index
    %c0_30 = arith.constant 0 : index
    %52 = vector.load %arg5[%c0_29, %c0_30] : memref<8x144xbf16, #tpu.memory_space<vmem>>, vector<8x144xbf16>
    %c0_31 = arith.constant 0 : index
    %c0_32 = arith.constant 0 : index
    %53 = vector.load %arg13[%c0_31, %c0_32] : memref<144x256xf32, #tpu.memory_space<vmem>>, vector<144x256xf32>
    %54 = arith.truncf %53 : vector<144x256xf32> to vector<144x256xbf16>
    %cst_33 = arith.constant dense<0.000000e+00> : vector<8x256xf32>
    %55 = tpu.matmul %52, %54, %cst_33 {dimension_numbers = #tpu.dot_dimension_numbers<[1], [0], [0], [1], [0, 0, 1, 1], [], []>} : vector<8x144xbf16>, vector<144x256xbf16>, vector<8x256xf32> -> vector<8x256xf32>
    %c0_34 = arith.constant 0 : index
    %c0_35 = arith.constant 0 : index
    %56 = vector.load %arg6[%c0_34, %c0_35] : memref<8x1xf32, #tpu.memory_space<vmem>>, vector<8x1xf32>
    %57 = vector.broadcast %56 : vector<8x1xf32> to vector<8x256xf32>
    %58 = arith.addf %55, %57 : vector<8x256xf32>
    %cst_36 = arith.constant 0.000000e+00 : f32
    %59 = vector.broadcast %cst_36 : f32 to vector<8x256xf32>
    %60 = arith.maximumf %58, %59 : vector<8x256xf32>
    %c8_37 = arith.constant 8 : index
    %c0_38 = arith.constant 0 : index
    %61 = vector.load %arg12[%c8_37, %c0_38] : memref<16x256xf32, #tpu.memory_space<vmem>>, vector<8x256xf32>
    tpu.vector_store %arg12[%c8_37, %c0_38], %60 {strides = array<i32>} : memref<16x256xf32, #tpu.memory_space<vmem>>, vector<8x256xf32>,
    %c0_39 = arith.constant 0 : index
    %c0_40 = arith.constant 0 : index
    %62 = vector.load %arg12[%c0_39, %c0_40] : memref<16x256xf32, #tpu.memory_space<vmem>>, vector<16x256xf32>
    %63 = arith.truncf %62 : vector<16x256xf32> to vector<16x256xbf16>
    %c0_41 = arith.constant 0 : index
    %c0_42 = arith.constant 0 : index
    %64 = vector.load %arg7[%c0_41, %c0_42] : memref<16x16xbf16, #tpu.memory_space<vmem>>, vector<16x16xbf16>
    %cst_43 = arith.constant dense<0.000000e+00> : vector<16x256xf32>
    %65 = tpu.matmul %64, %63, %cst_43 {dimension_numbers = #tpu.dot_dimension_numbers<[1], [0], [0], [1], [0, 0, 1, 1], [], []>} : vector<16x16xbf16>, vector<16x256xbf16>, vector<16x256xf32> -> vector<16x256xf32>
    %c0_44 = arith.constant 0 : index
    %c0_45 = arith.constant 0 : index
    %66 = vector.load %arg8[%c0_44, %c0_45] : memref<16x1xf32, #tpu.memory_space<vmem>>, vector<16x1xf32>
    %67 = vector.broadcast %66 : vector<16x1xf32> to vector<16x256xf32>
    %68 = arith.addf %65, %67 : vector<16x256xf32>
    %cst_46 = arith.constant 0.000000e+00 : f32
    %69 = vector.broadcast %cst_46 : f32 to vector<16x256xf32>
    %70 = arith.maximumf %68, %69 : vector<16x256xf32>
    %c17_i32_47 = arith.constant 17 : i32
    %71 = tpu.dynamic_rotate %70 by %c17_i32_47 dim 1 : vector<16x256xf32>, i32 -> vector<16x256xf32>
    %c0_48 = arith.constant 0 : index
    %c0_49 = arith.constant 0 : index
    %72 = vector.load %arg2[%c0_48, %c0_49] : memref<9x256xf32, #tpu.memory_space<vmem>>, vector<1x256xf32>
    %73 = vector.broadcast %72 : vector<1x256xf32> to vector<16x256xf32>
    %74 = arith.mulf %71, %73 : vector<16x256xf32>
    %c0_50 = arith.constant 0 : index
    %c0_51 = arith.constant 0 : index
    %75 = vector.load %arg13[%c0_50, %c0_51] : memref<144x256xf32, #tpu.memory_space<vmem>>, vector<16x256xf32>
    tpu.vector_store %arg13[%c0_50, %c0_51], %74 {strides = array<i32>} : memref<144x256xf32, #tpu.memory_space<vmem>>, vector<16x256xf32>,
    %c16_i32_52 = arith.constant 16 : i32
    %76 = tpu.dynamic_rotate %70 by %c16_i32_52 dim 1 : vector<16x256xf32>, i32 -> vector<16x256xf32>
    %c1_53 = arith.constant 1 : index
    %c0_54 = arith.constant 0 : index
    %77 = vector.load %arg2[%c1_53, %c0_54] : memref<9x256xf32, #tpu.memory_space<vmem>>, vector<1x256xf32>
    %78 = vector.broadcast %77 : vector<1x256xf32> to vector<16x256xf32>
    %79 = arith.mulf %76, %78 : vector<16x256xf32>
    %c16_55 = arith.constant 16 : index
    %c0_56 = arith.constant 0 : index
    %80 = vector.load %arg13[%c16_55, %c0_56] : memref<144x256xf32, #tpu.memory_space<vmem>>, vector<16x256xf32>
    tpu.vector_store %arg13[%c16_55, %c0_56], %79 {strides = array<i32>} : memref<144x256xf32, #tpu.memory_space<vmem>>, vector<16x256xf32>,
    %c15_i32_57 = arith.constant 15 : i32
    %81 = tpu.dynamic_rotate %70 by %c15_i32_57 dim 1 : vector<16x256xf32>, i32 -> vector<16x256xf32>
    %c2_58 = arith.constant 2 : index
    %c0_59 = arith.constant 0 : index
    %82 = vector.load %arg2[%c2_58, %c0_59] : memref<9x256xf32, #tpu.memory_space<vmem>>, vector<1x256xf32>
    %83 = vector.broadcast %82 : vector<1x256xf32> to vector<16x256xf32>
    %84 = arith.mulf %81, %83 : vector<16x256xf32>
    %c32_60 = arith.constant 32 : index
    %c0_61 = arith.constant 0 : index
    %85 = vector.load %arg13[%c32_60, %c0_61] : memref<144x256xf32, #tpu.memory_space<vmem>>, vector<16x256xf32>
    tpu.vector_store %arg13[%c32_60, %c0_61], %84 {strides = array<i32>} : memref<144x256xf32, #tpu.memory_space<vmem>>, vector<16x256xf32>,
    %c1_i32_62 = arith.constant 1 : i32
    %86 = tpu.dynamic_rotate %70 by %c1_i32_62 dim 1 : vector<16x256xf32>, i32 -> vector<16x256xf32>
    %c3_63 = arith.constant 3 : index
    %c0_64 = arith.constant 0 : index
    %87 = vector.load %arg2[%c3_63, %c0_64] : memref<9x256xf32, #tpu.memory_space<vmem>>, vector<1x256xf32>
    %88 = vector.broadcast %87 : vector<1x256xf32> to vector<16x256xf32>
    %89 = arith.mulf %86, %88 : vector<16x256xf32>
    %c48_65 = arith.constant 48 : index
    %c0_66 = arith.constant 0 : index
    %90 = vector.load %arg13[%c48_65, %c0_66] : memref<144x256xf32, #tpu.memory_space<vmem>>, vector<16x256xf32>
    tpu.vector_store %arg13[%c48_65, %c0_66], %89 {strides = array<i32>} : memref<144x256xf32, #tpu.memory_space<vmem>>, vector<16x256xf32>,
    %c64_67 = arith.constant 64 : index
    %c0_68 = arith.constant 0 : index
    %91 = vector.load %arg13[%c64_67, %c0_68] : memref<144x256xf32, #tpu.memory_space<vmem>>, vector<16x256xf32>
    tpu.vector_store %arg13[%c64_67, %c0_68], %70 {strides = array<i32>} : memref<144x256xf32, #tpu.memory_space<vmem>>, vector<16x256xf32>,
    %c255_i32_69 = arith.constant 255 : i32
    %92 = tpu.dynamic_rotate %70 by %c255_i32_69 dim 1 : vector<16x256xf32>, i32 -> vector<16x256xf32>
    %c5_70 = arith.constant 5 : index
    %c0_71 = arith.constant 0 : index
    %93 = vector.load %arg2[%c5_70, %c0_71] : memref<9x256xf32, #tpu.memory_space<vmem>>, vector<1x256xf32>
    %94 = vector.broadcast %93 : vector<1x256xf32> to vector<16x256xf32>
    %95 = arith.mulf %92, %94 : vector<16x256xf32>
    %c80_72 = arith.constant 80 : index
    %c0_73 = arith.constant 0 : index
    %96 = vector.load %arg13[%c80_72, %c0_73] : memref<144x256xf32, #tpu.memory_space<vmem>>, vector<16x256xf32>
    tpu.vector_store %arg13[%c80_72, %c0_73], %95 {strides = array<i32>} : memref<144x256xf32, #tpu.memory_space<vmem>>, vector<16x256xf32>,
    %c241_i32_74 = arith.constant 241 : i32
    %97 = tpu.dynamic_rotate %70 by %c241_i32_74 dim 1 : vector<16x256xf32>, i32 -> vector<16x256xf32>
    %c6_75 = arith.constant 6 : index
    %c0_76 = arith.constant 0 : index
    %98 = vector.load %arg2[%c6_75, %c0_76] : memref<9x256xf32, #tpu.memory_space<vmem>>, vector<1x256xf32>
    %99 = vector.broadcast %98 : vector<1x256xf32> to vector<16x256xf32>
    %100 = arith.mulf %97, %99 : vector<16x256xf32>
    %c96_77 = arith.constant 96 : index
    %c0_78 = arith.constant 0 : index
    %101 = vector.load %arg13[%c96_77, %c0_78] : memref<144x256xf32, #tpu.memory_space<vmem>>, vector<16x256xf32>
    tpu.vector_store %arg13[%c96_77, %c0_78], %100 {strides = array<i32>} : memref<144x256xf32, #tpu.memory_space<vmem>>, vector<16x256xf32>,
    %c240_i32_79 = arith.constant 240 : i32
    %102 = tpu.dynamic_rotate %70 by %c240_i32_79 dim 1 : vector<16x256xf32>, i32 -> vector<16x256xf32>
    %c7_80 = arith.constant 7 : index
    %c0_81 = arith.constant 0 : index
    %103 = vector.load %arg2[%c7_80, %c0_81] : memref<9x256xf32, #tpu.memory_space<vmem>>, vector<1x256xf32>
    %104 = vector.broadcast %103 : vector<1x256xf32> to vector<16x256xf32>
    %105 = arith.mulf %102, %104 : vector<16x256xf32>
    %c112_82 = arith.constant 112 : index
    %c0_83 = arith.constant 0 : index
    %106 = vector.load %arg13[%c112_82, %c0_83] : memref<144x256xf32, #tpu.memory_space<vmem>>, vector<16x256xf32>
    tpu.vector_store %arg13[%c112_82, %c0_83], %105 {strides = array<i32>} : memref<144x256xf32, #tpu.memory_space<vmem>>, vector<16x256xf32>,
    %c239_i32_84 = arith.constant 239 : i32
    %107 = tpu.dynamic_rotate %70 by %c239_i32_84 dim 1 : vector<16x256xf32>, i32 -> vector<16x256xf32>
    %c8_85 = arith.constant 8 : index
    %c0_86 = arith.constant 0 : index
    %108 = vector.load %arg2[%c8_85, %c0_86] : memref<9x256xf32, #tpu.memory_space<vmem>>, vector<1x256xf32>
    %109 = vector.broadcast %108 : vector<1x256xf32> to vector<16x256xf32>
    %110 = arith.mulf %107, %109 : vector<16x256xf32>
    %c128_87 = arith.constant 128 : index
    %c0_88 = arith.constant 0 : index
    %111 = vector.load %arg13[%c128_87, %c0_88] : memref<144x256xf32, #tpu.memory_space<vmem>>, vector<16x256xf32>
    tpu.vector_store %arg13[%c128_87, %c0_88], %110 {strides = array<i32>} : memref<144x256xf32, #tpu.memory_space<vmem>>, vector<16x256xf32>,
    %c0_89 = arith.constant 0 : index
    %c0_90 = arith.constant 0 : index
    %112 = vector.load %arg9[%c0_89, %c0_90] : memref<8x144xbf16, #tpu.memory_space<vmem>>, vector<8x144xbf16>
    %c0_91 = arith.constant 0 : index
    %c0_92 = arith.constant 0 : index
    %113 = vector.load %arg13[%c0_91, %c0_92] : memref<144x256xf32, #tpu.memory_space<vmem>>, vector<144x256xf32>
    %114 = arith.truncf %113 : vector<144x256xf32> to vector<144x256xbf16>
    %cst_93 = arith.constant dense<0.000000e+00> : vector<8x256xf32>
    %115 = tpu.matmul %112, %114, %cst_93 {dimension_numbers = #tpu.dot_dimension_numbers<[1], [0], [0], [1], [0, 0, 1, 1], [], []>} : vector<8x144xbf16>, vector<144x256xbf16>, vector<8x256xf32> -> vector<8x256xf32>
    %c0_94 = arith.constant 0 : index
    %c0_95 = arith.constant 0 : index
    %116 = vector.load %arg10[%c0_94, %c0_95] : memref<8x1xf32, #tpu.memory_space<vmem>>, vector<8x1xf32>
    %117 = vector.broadcast %116 : vector<8x1xf32> to vector<8x256xf32>
    %118 = arith.addf %115, %117 : vector<8x256xf32>
    %cst_96 = arith.constant 0.000000e+00 : f32
    %119 = vector.broadcast %cst_96 : f32 to vector<8x256xf32>
    %120 = arith.maximumf %118, %119 : vector<8x256xf32>
    %c0_97 = arith.constant 0 : index
    %c0_98 = arith.constant 0 : index
    %121 = vector.load %arg11[%c0_97, %c0_98] : memref<8x256xf32, #tpu.memory_space<vmem>>, vector<8x256xf32>
    tpu.vector_store %arg11[%c0_97, %c0_98], %120 {strides = array<i32>} : memref<8x256xf32, #tpu.memory_space<vmem>>, vector<8x256xf32>,
    return
  }
  func.func @transform_0(%arg0: i32) -> (i32, i32) {
    %c0_i32 = arith.constant 0 : i32
    %c0_i32_0 = arith.constant 0 : i32
    return %c0_i32, %arg0 : i32, i32
  }
  func.func @transform_1(%arg0: i32) -> (i32, i32) {
    %c0_i32 = arith.constant 0 : i32
    %c0_i32_0 = arith.constant 0 : i32
    %c0_i32_1 = arith.constant 0 : i32
    return %c0_i32, %c0_i32_0 : i32, i32
  }
  func.func @transform_2(%arg0: i32) -> (i32, i32) {
    %c0_i32 = arith.constant 0 : i32
    %c0_i32_0 = arith.constant 0 : i32
    %c0_i32_1 = arith.constant 0 : i32
    return %c0_i32, %c0_i32_0 : i32, i32
  }
  func.func @transform_3(%arg0: i32) -> (i32, i32) {
    %c0_i32 = arith.constant 0 : i32
    %c0_i32_0 = arith.constant 0 : i32
    %c0_i32_1 = arith.constant 0 : i32
    return %c0_i32, %c0_i32_0 : i32, i32
  }
  func.func @transform_4(%arg0: i32) -> (i32, i32) {
    %c0_i32 = arith.constant 0 : i32
    %c0_i32_0 = arith.constant 0 : i32
    %c0_i32_1 = arith.constant 0 : i32
    return %c0_i32, %c0_i32_0 : i32, i32
  }
  func.func @transform_5(%arg0: i32) -> (i32, i32) {
    %c0_i32 = arith.constant 0 : i32
    %c0_i32_0 = arith.constant 0 : i32
    %c0_i32_1 = arith.constant 0 : i32
    return %c0_i32, %c0_i32_0 : i32, i32
  }
  func.func @transform_6(%arg0: i32) -> (i32, i32) {
    %c0_i32 = arith.constant 0 : i32
    %c0_i32_0 = arith.constant 0 : i32
    %c0_i32_1 = arith.constant 0 : i32
    return %c0_i32, %c0_i32_0 : i32, i32
  }
  func.func @transform_7(%arg0: i32) -> (i32, i32) {
    %c0_i32 = arith.constant 0 : i32
    %c0_i32_0 = arith.constant 0 : i32
    %c0_i32_1 = arith.constant 0 : i32
    return %c0_i32, %c0_i32_0 : i32, i32
  }
  func.func @transform_8(%arg0: i32) -> (i32, i32) {
    %c0_i32 = arith.constant 0 : i32
    %c0_i32_0 = arith.constant 0 : i32
    %c0_i32_1 = arith.constant 0 : i32
    return %c0_i32, %c0_i32_0 : i32, i32
  }
  func.func @transform_9(%arg0: i32) -> (i32, i32) {
    %c0_i32 = arith.constant 0 : i32
    %c0_i32_0 = arith.constant 0 : i32
    %c0_i32_1 = arith.constant 0 : i32
    return %c0_i32, %c0_i32_0 : i32, i32
  }
  func.func @transform_10(%arg0: i32) -> (i32, i32) {
    %c0_i32 = arith.constant 0 : i32
    %c0_i32_0 = arith.constant 0 : i32
    return %c0_i32, %arg0 : i32, i32
  }
}

</mosaic_0001>

<bundles_post_ra>
// kernel: dense_block_forward.1
= control target key start
LH: loop header
LB: loop body
LE: loop exit
PB: predicated region body
PF: predicated region fallthrough
CT: control target
= control target key end

     0   :  { %s1481_s13 = smov 0   ;;  %s2018_s0 = inlined_call_operand.vmem [shape: f32[8,512], index: 0, kind: input, shape index: {}]   ;;  %s2019_s1 = inlined_call_operand.vmem [shape: f32[9,256], index: 1, kind: input, shape index: {}]   ;;  %s2020_s2 = inlined_call_operand.vmem [shape: bf16[16,8], index: 2, kind: input, shape index: {}]   ;;  %s2021_s3 = inlined_call_operand.vmem [shape: f32[16,1], index: 3, kind: input, shape index: {}]   ;;  %s2022_s4 = inlined_call_operand.vmem [shape: bf16[8,144], index: 4, kind: input, shape index: {}]   ;;  %s2023_s5 = inlined_call_operand.vmem [shape: f32[8,1], index: 5, kind: input, shape index: {}]   ;;  %s2024_s6 = inlined_call_operand.vmem [shape: bf16[16,16], index: 6, kind: input, shape index: {}]   ;;  %s2025_s7 = inlined_call_operand.vmem [shape: f32[16,1], index: 7, kind: input, shape index: {}]   ;;  %s2026_s8 = inlined_call_operand.vmem [shape: bf16[8,144], index: 8, kind: input, shape index: {}]   ;;  %s2027_s9 = inlined_call_operand.vmem [shape: f32[8,1], index: 9, kind: input, shape index: {}]   ;;  %s2028_s10 = inlined_call_operand.vmem [shape: f32[8,512], index: 10, kind: output, shape index: {}]  }
   0x1 LB: > { %s1348_s14 = sadd.s32 4294967295, %s1415_s13   ;;  %p1352_p0 = scmp.ge.s32.totalorder %s1415_s13, 1  ;;  %s1415_s13 = sphi %s1481_s13, %s20_s13  }
   0x2   : > { %p313_p1 = scmp.lt.s32.totalorder %s1415_s13, 3 }
   0x4   : > { %p314_p2 = pnand %p1352_p0, %p313_p1 }
   0x5   : > { %s1353_s15 = sshll.u32 (!%p314_p2), %s1348_s14, 1  ;;  %v1417_v0 = vmov (!%p314_p2), 0   ;;  %v374_v1 = vld [vmem:[%s2021_s3] sm:$0xff] (!%p314_p2)  ;;  %v375_v2 = vld [vmem:[%s2021_s3 + $0x8] sm:$0xff] (!%p314_p2)  ;;  %vm395_vm0 = vcmask (!%p314_p2), 1043456   ;;  %vm391_vm1 = vcmask (!%p314_p2), 64512   ;;  %v457_v39 = vlaneseq (!%p314_p2) }
   0x6   : > { %317 = sbr.rel (%p314_p2) target bundleno = 1270 (0x4f6), region = 60  ;;  %p352_p3 = scmp.lt.s32.totalorder (!%p314_p2), %s1353_s15, 3  ;;  %434 = vmatprep.mubr.bf16.mxu1 (!%p314_p2), %v1417_v0  ;;  %1401 = vset.pattern.permute.xlu0 (!%p314_p2), %v1417_v0  ;;  %v1403_v8 = vld [vmem:[%s2020_s2] sm:$0xff] (!%p314_p2)   ;;  %vm793_vm2 = vcmask (!%p314_p2), 130048   ;;  %v851_v28 = vld [vmem:[%s2025_s7 + $0x8] sm:$0xff] (!%p314_p2) }
   0x7   : > { %378 = vperm.xlu0 (!%p314_p2), %1401, %v374_v1   ;;  %902 = vmatprep.mubr.bf16.mxu0 (!%p314_p2), %v1417_v0  ;;  %s1418_s26 = smov (!%p314_p2), 16   ;;  %s1419_s27 = smov (!%p314_p2), 17   ;;  %v1589_v25 = vld [vmem:[%s2022_s4] sm:$0xff] (!%p314_p2)  ;;  %v467_v42 = vshrl.u32 (!%p314_p2), %v457_v39, 7  ;;  %v1616_v43 = vand.u32 (!%p314_p2), 127, %v457_v39 }
   0x8   : > { %1402 = vset.pattern.permute.xlu1 (!%p314_p2), %v1417_v0  ;;  %s1420_s28 = smov (!%p314_p2), 15   ;;  %s1421_s29 = smov (!%p314_p2), 1   ;;  %v781_v26 = vld [vmem:[%s2023_s5] sm:$0xff] (!%p314_p2)  ;;  %v1368_v27 = vcombine.high (!%p314_p2), %v1589_v25, %v1589_v25 }
   0x9   : > { %s1422_s30 = smov (!%p314_p2), 127   ;;  %s1423_s11 = smov (!%p314_p2), 113   ;;  %v1620_v46 = vsub.s32 (!%p314_p2), 0, %v467_v42  ;;  %v1622_v47 = vsub.s32 (!%p314_p2), 1, %v467_v42  ;;  %vm459_vm3 = vcmp.lt.s32.totalorder (!%p314_p2), %v1616_v43, 17  ;;  %vm492_vm4 = vcmp.lt.s32.totalorder (!%p314_p2), %v1616_v43, 16 }
   0xa   : > { %s1424_s12 = smov (!%p314_p2), 112   ;;  %s1425_s14 = smov (!%p314_p2), 111   ;;  %v464_v48 = vld [vmem:[%s2019_s1] ss:$8 sm:$0x3] (!%p314_p2)  ;;  %vm526_vm5 = vcmp.lt.s32.totalorder (!%p314_p2), %v1616_v43, 15 }
   0xb   : > { %383 = vperm.xlu0 (!%p314_p2), %1401, %v375_v2   ;;  %v469_v51 = vrot.slane (!%p314_p2), %v464_v48, %v1620_v46  ;;  %v473_v52 = vrot.slane (!%p314_p2), %v464_v48, %v1622_v47  ;;  %v1360_v53 = vld [vmem:[%s2019_s1 + $0x1] ss:$8 sm:$0x3] (!%p314_p2)  ;;  %v1361_v0 = vld [vmem:[%s2019_s1 + $0x2] ss:$8 sm:$0x3] (!%p314_p2) }
   0xc   : > { %v503_v58 = vrot.slane (!%p314_p2), %v1360_v53, %v1620_v46  ;;  %v507_v59 = vrot.slane (!%p314_p2), %v1360_v53, %v1622_v47  ;;  %vm560_vm6 = vcmp.lt.s32.totalorder (!%p314_p2), %v1616_v43, 1  ;;  %vm598_vm7 = vcmp.lt.s32.totalorder (!%p314_p2), %v1616_v43, 127 }
   0xd   : > { %s2030_s15 = smov (!%p352_p3, %s1353_s15), 3  ;;  %vm632_vm8 = vcmp.lt.s32.totalorder %v1616_v43, 113  ;;  %vm666_vm9 = vcmp.lt.s32.totalorder %v1616_v43, 112  ;;  %vm700_vm10 = vcmp.lt.s32.totalorder %v1616_v43, 111 }
   0xe   : > { %s1354_s20 = sshll.u32 %s2030_s15, 3 }
   0xf   : > { %s355_s23 = scalar_lea.vmem %s2018_s0, %s1354_s20 }
  0x10   : > { %v1503_v3 = vld [vmem:[%s355_s23 + $0x8] sm:$0xff]  ;;  %v1505_v4 = vld [vmem:[%s355_s23] sm:$0xff] }
  0x11   : > { %v371_v5 = vpack.c.bf16 %v1503_v3, %v1503_v3  ;;  %v370_v6 = vpack.c.bf16 %v1505_v4, %v1505_v4 }
  0x13   : > { %1358 = vmatprep.subr.msk.bf16.mxu1 %vm395_vm0, %v371_v5  ;;  %v397_v7 = vsel %vm395_vm0, %v370_v6, 0 }
  0x14   : > { %403 = vmatpush1.bf16.msra.mxu1 %v397_v7 }
  0x17   : > { %1359 = vmatmul.mubr.msk.bf16.vlgmr.msra.gmra.mrb[0].mxu1 %vm391_vm1, %v1403_v8 }
  0x18   : > { %1369 = vmatprep.mubr.msk.bf16.mxu1 %vm793_vm2, %v1368_v27 }
  0x86   : > { %v379_v9 = vpop.permute.xlu0 %378 }
  0x8a   : > { %v384_v13 = vpop.permute.xlu0 %383 }
  0xea   : > { %v436_v10 = vpop.f32.mrb[0].mxu1 }
  0xeb   : > { %v437_v11 = vadd.f32 %v436_v10, %v379_v9  ;;  %v438_v12 = vpop.f32.mrb[1].mxu1 }
  0xec   : > { %v439_v14 = vadd.f32 %v438_v12, %v379_v9  ;;  %v440_v15 = vpop.f32.mrb[2].mxu1  ;;  %v541_v12 = vrot.slane %v1361_v0, %v1622_v47 }
  0xed   : > { %v1514_v16 = vmax.f32 %v437_v11, 0.0  ;;  %v441_v17 = vadd.f32 %v440_v15, %v384_v13  ;;  %v442_v18 = vpop.f32.mrb[3].mxu1  ;;  %v537_v11 = vrot.slane %v1361_v0, %v1620_v46 }
  0xee   : > { %v443_v19 = vadd.f32 %v442_v18, %v384_v13  ;;  %v1522_v21 = vmax.f32 %v439_v14, 0.0  ;;  %v1362_v18 = vld [vmem:[%s2019_s1 + $0x3] ss:$8 sm:$0x3] }
  0xef   : > { %v1516_v20 = vmax.f32 %v441_v17, 0.0  ;;  %484 = vrot.lane.b32.xlu0 %v1514_v16, %s1418_s26  ;;  %449 = vrot.lane.b32.xlu1 %v1514_v16, %s1419_s27  ;;  %v571_v39 = vrot.slane %v1362_v18, %v1620_v46  ;;  %v575_v42 = vrot.slane %v1362_v18, %v1622_v47 }
  0xf0   : > { %v1524_v22 = vmax.f32 %v443_v19, 0.0 }
  0xf1   : > { %v771_v23 = vpack.c.bf16 %v1516_v20, %v1514_v16 }
  0xf2   : > { %v772_v24 = vpack.c.bf16 %v1524_v22, %v1522_v21 }
  0xf3   : > { %518 = vrot.lane.b32.xlu0 %v1514_v16, %s1420_s28  ;;  %451 = vrot.lane.b32.xlu1 %v1516_v20, %s1419_s27 }
  0xf7   : > { %552 = vrot.lane.b32.xlu0 %v1514_v16, %s1421_s29  ;;  %486 = vrot.lane.b32.xlu1 %v1516_v20, %s1418_s26 }
  0xfb   : > { %590 = vrot.lane.b32.xlu0 %v1514_v16, %s1422_s30  ;;  %520 = vrot.lane.b32.xlu1 %v1516_v20, %s1420_s28 }
  0xff   : > { %624 = vrot.lane.b32.xlu0 %v1514_v16, %s1423_s11  ;;  %554 = vrot.lane.b32.xlu1 %v1516_v20, %s1421_s29 }
 0x103   : > { %658 = vrot.lane.b32.xlu0 %v1514_v16, %s1424_s12  ;;  %592 = vrot.lane.b32.xlu1 %v1516_v20, %s1422_s30 }
 0x107   : > { %453 = vrot.lane.b32.xlu0 %v1522_v21, %s1419_s27  ;;  %626 = vrot.lane.b32.xlu1 %v1516_v20, %s1423_s11 }
 0x10b   : > { %488 = vrot.lane.b32.xlu0 %v1522_v21, %s1418_s26  ;;  %660 = vrot.lane.b32.xlu1 %v1516_v20, %s1424_s12 }
 0x10f   : > { %522 = vrot.lane.b32.xlu0 %v1522_v21, %s1420_s28  ;;  %455 = vrot.lane.b32.xlu1 %v1524_v22, %s1419_s27 }
 0x113   : > { %556 = vrot.lane.b32.xlu0 %v1522_v21, %s1421_s29  ;;  %490 = vrot.lane.b32.xlu1 %v1524_v22, %s1418_s26 }
 0x117   : > { %692 = vrot.lane.b32.xlu0 %v1514_v16, %s1425_s14  ;;  %524 = vrot.lane.b32.xlu1 %v1524_v22, %s1420_s28 }
 0x11b   : > { %594 = vrot.lane.b32.xlu0 %v1522_v21, %s1422_s30  ;;  %558 = vrot.lane.b32.xlu1 %v1524_v22, %s1421_s29 }
 0x11f   : > { %628 = vrot.lane.b32.xlu0 %v1522_v21, %s1423_s11  ;;  %694 = vrot.lane.b32.xlu1 %v1516_v20, %s1425_s14  ;;  %v1366_v20 = vld [vmem:[%s2019_s1 + $0x10] ss:$8 sm:$0x3] }
 0x123   : > { %662 = vrot.lane.b32.xlu0 %v1522_v21, %s1424_s12  ;;  %596 = vrot.lane.b32.xlu1 %v1524_v22, %s1422_s30 }
 0x127   : > { %696 = vrot.lane.b32.xlu0 %v1522_v21, %s1425_s14  ;;  %630 = vrot.lane.b32.xlu1 %v1524_v22, %s1423_s11  ;;  %v1365_v21 = vld [vmem:[%s2019_s1 + $0x7] ss:$8 sm:$0x3] }
 0x12b   : > { %784 = vperm.xlu0 %1401, %v781_v26   ;;  %664 = vrot.lane.b32.xlu1 %v1524_v22, %s1424_s12 }
 0x12f   : > { %859 = vperm.xlu0 %1401, %v851_v28   ;;  %698 = vrot.lane.b32.xlu1 %v1524_v22, %s1425_s14 }
 0x161   : > { %v485_v29 = vpop.permute.xlu0 %484  ;;  %v450_v30 = vpop.permute.xlu1 %449 }
 0x165   : > { %v519_v31 = vpop.permute.xlu0 %518  ;;  %v452_v32 = vpop.permute.xlu1 %451 }
 0x169   : > { %v1604_v33 = vpop.permute.xlu0 %552  ;;  %v487_v34 = vpop.permute.xlu1 %486 }
 0x16d   : > { %v1606_v35 = vpop.permute.xlu0 %590  ;;  %v521_v36 = vpop.permute.xlu1 %520 }
 0x171   : > { %v1608_v37 = vpop.permute.xlu0 %624  ;;  %v1610_v38 = vpop.permute.xlu1 %554 }
 0x175   : > { %v1612_v40 = vpop.permute.xlu0 %658  ;;  %v1614_v41 = vpop.permute.xlu1 %592 }
 0x179   : > { %v454_v44 = vpop.permute.xlu0 %453  ;;  %v1618_v45 = vpop.permute.xlu1 %626 }
 0x17a   : > { %v460_v54 = vsel %vm459_vm3, %v450_v30, %v454_v44  ;;  %v462_v55 = vsel %vm459_vm3, %v454_v44, %v450_v30 }
 0x17b   : > { %v476_v62 = vmul.f32 %v469_v51, %v462_v55  ;;  %v477_v63 = vmul.f32 %v473_v52, %v460_v54 }
 0x17d   : > { %v489_v49 = vpop.permute.xlu0 %488  ;;  %v1628_v50 = vpop.permute.xlu1 %660 }
 0x17e   : > { %v493_v5 = vsel %vm492_vm4, %v485_v29, %v489_v49  ;;  %v495_v6 = vsel %vm492_vm4, %v489_v49, %v485_v29 }
 0x17f   : > { %v510_v15 = vmul.f32 %v503_v58, %v495_v6  ;;  %v511_v17 = vmul.f32 %v507_v59, %v493_v5 }
 0x181   : > { %v523_v56 = vpop.permute.xlu0 %522  ;;  %v456_v57 = vpop.permute.xlu1 %455 }
 0x182   : > { %v461_v60 = vsel %vm459_vm3, %v452_v32, %v456_v57  ;;  %v463_v61 = vsel %vm459_vm3, %v456_v57, %v452_v32  ;;  %v527_v27 = vsel %vm526_vm5, %v519_v31, %v523_v56  ;;  %v529_v28 = vsel %vm526_vm5, %v523_v56, %v519_v31 }
 0x183   : > { %v478_v1 = vmul.f32 %v469_v51, %v463_v61  ;;  %v479_v2 = vmul.f32 %v473_v52, %v461_v60  ;;  %v544_v49 = vmul.f32 %v537_v11, %v529_v28  ;;  %v545_v31 = vmul.f32 %v541_v12, %v527_v27 }
 0x184   : > { %v677_v28 = vrot.slane %v1365_v21, %v1620_v46 }
 0x185   : > { %v763_v7 = vpack.c.bf16 %v478_v1, %v476_v62  ;;  %v557_v8 = vpop.permute.xlu0 %556  ;;  %v491_v9 = vpop.permute.xlu1 %490  ;;  %v764_v10 = vpack.c.bf16 %v479_v2, %v477_v63 }
 0x186   : > { %v494_v13 = vsel %vm492_vm4, %v487_v34, %v491_v9  ;;  %v496_v14 = vsel %vm492_vm4, %v491_v9, %v487_v34  ;;  %v561_v53 = vsel %vm560_vm6, %v1604_v33, %v557_v8  ;;  %v563_v54 = vsel %vm560_vm6, %v557_v8, %v1604_v33  ;;  %v1363_v33 = vld [vmem:[%s2019_s1 + $0x5] ss:$8 sm:$0x3] }
 0x187   : > { %v512_v19 = vmul.f32 %v503_v58, %v496_v14  ;;  %v513_v26 = vmul.f32 %v507_v59, %v494_v13  ;;  %797 = vmatprep.subr.bf16.mxu1 %v764_v10  ;;  %v578_v60 = vmul.f32 %v571_v39, %v563_v54  ;;  %v579_v61 = vmul.f32 %v575_v42, %v561_v53 }
 0x188   : > { %798 = vmatpush1.bf16.msra.mxu1 %v763_v7  ;;  %v609_v6 = vrot.slane %v1363_v33, %v1620_v46  ;;  %v1364_v7 = vld [vmem:[%s2019_s1 + $0x6] ss:$8 sm:$0x3] }
 0x189   : > { %v765_v29 = vpack.c.bf16 %v512_v19, %v510_v15  ;;  %v1668_v30 = vpop.permute.xlu0 %692  ;;  %v525_v32 = vpop.permute.xlu1 %524  ;;  %v766_v34 = vpack.c.bf16 %v513_v26, %v511_v17 }
 0x18a   : > { %v528_v44 = vsel %vm526_vm5, %v521_v36, %v525_v32  ;;  %v530_v48 = vsel %vm526_vm5, %v525_v32, %v521_v36 }
 0x18b   : > { %v546_v51 = vmul.f32 %v537_v11, %v530_v48  ;;  %v547_v52 = vmul.f32 %v541_v12, %v528_v44  ;;  %799 = vmatprep.subr.bf16.mxu1 %v766_v34  ;;  %v643_v11 = vrot.slane %v1364_v7, %v1620_v46  ;;  %v647_v12 = vrot.slane %v1364_v7, %v1622_v47 }
 0x18c   : > { %800 = vmatpush1.bf16.msra.mxu1 %v765_v29  ;;  %v681_v29 = vrot.slane %v1365_v21, %v1622_v47 }
 0x18d   : > { %v767_v55 = vpack.c.bf16 %v546_v51, %v544_v49  ;;  %v595_v56 = vpop.permute.xlu0 %594  ;;  %v559_v57 = vpop.permute.xlu1 %558  ;;  %v768_v58 = vpack.c.bf16 %v547_v52, %v545_v31  ;;  %v711_v51 = vrot.slane %v1366_v20, %v1620_v46  ;;  %v715_v52 = vrot.slane %v1366_v20, %v1622_v47 }
 0x18e   : > { %v562_v36 = vsel %vm560_vm6, %v1610_v38, %v559_v57  ;;  %v564_v59 = vsel %vm560_vm6, %v559_v57, %v1610_v38  ;;  %v613_v38 = vrot.slane %v1363_v33, %v1622_v47  ;;  %v599_v8 = vsel %vm598_vm7, %v1606_v35, %v595_v56 }
 0x18f   : > { %v580_v62 = vmul.f32 %v571_v39, %v564_v59  ;;  %v581_v63 = vmul.f32 %v575_v42, %v562_v36  ;;  %801 = vmatprep.subr.bf16.mxu1 %v768_v58  ;;  %v601_v9 = vsel %vm598_vm7, %v595_v56, %v1606_v35  ;;  %v616_v14 = vmul.f32 %v609_v6, %v599_v8 }
 0x190   : > { %802 = vmatpush1.bf16.msra.mxu1 %v767_v55  ;;  %v617_v15 = vmul.f32 %v613_v38, %v601_v9 }
 0x191   : > { %v769_v0 = vpack.c.bf16 %v580_v62, %v578_v60  ;;  %v629_v1 = vpop.permute.xlu0 %628  ;;  %v1692_v2 = vpop.permute.xlu1 %694  ;;  %v770_v5 = vpack.c.bf16 %v581_v63, %v579_v61 }
 0x192   : > { %v633_v18 = vsel %vm632_vm8, %v1608_v37, %v629_v1  ;;  %v635_v19 = vsel %vm632_vm8, %v629_v1, %v1608_v37 }
 0x193   : > { %803 = vmatprep.subr.bf16.mxu1 %v770_v5  ;;  %v650_v34 = vmul.f32 %v643_v11, %v633_v18  ;;  %v651_v16 = vmul.f32 %v647_v12, %v635_v19 }
 0x194   : > { %804 = vmatpush1.bf16.msra.mxu1 %v769_v0 }
 0x195   : > { %805 = vmatprep.subr.bf16.mxu1 %v772_v24  ;;  %v597_v10 = vpop.permute.xlu1 %596  ;;  %v663_v22 = vpop.permute.xlu0 %662 }
 0x196   : > { %v600_v13 = vsel %vm598_vm7, %v1614_v41, %v597_v10  ;;  %v602_v35 = vsel %vm598_vm7, %v597_v10, %v1614_v41  ;;  %v667_v42 = vsel %vm666_vm9, %v1612_v40, %v663_v22  ;;  %v669_v44 = vsel %vm666_vm9, %v663_v22, %v1612_v40 }
 0x197   : > { %v618_v24 = vmul.f32 %v609_v6, %v600_v13  ;;  %v619_v17 = vmul.f32 %v613_v38, %v602_v35  ;;  %v684_v40 = vmul.f32 %v677_v28, %v667_v42  ;;  %v685_v55 = vmul.f32 %v681_v29, %v669_v44  ;;  %v850_v38 = vld [vmem:[%s2025_s7] sm:$0xff] }
 0x198   : > { %806 = vmatpush1.bf16.msra.mxu1 %v771_v23  ;;  %v1367_v6 = vcombine.low %v1589_v25, %v1589_v25  ;;  %854 = vperm.xlu1 %1402, %v850_v38  }
 0x199   : > { %v773_v41 = vpack.c.bf16 %v618_v24, %v616_v14  ;;  %v631_v26 = vpop.permute.xlu1 %630  ;;  %v774_v27 = vpack.c.bf16 %v619_v17, %v617_v15  ;;  %v1406_v15 = vld [vmem:[%s2024_s6] sm:$0xff]  }
 0x19a   : > { %v634_v32 = vsel %vm632_vm8, %v1618_v45, %v631_v26  ;;  %v636_v37 = vsel %vm632_vm8, %v631_v26, %v1618_v45  ;;  %v697_v45 = vpop.permute.xlu0 %696 }
 0x19b   : > { %v652_v23 = vmul.f32 %v643_v11, %v634_v32  ;;  %v653_v39 = vmul.f32 %v647_v12, %v636_v37  ;;  %807 = vmatprep.subr.bf16.mxu1 %v774_v27  ;;  %v701_v58 = vsel %vm700_vm10, %v1668_v30, %v697_v45  ;;  %v703_v36 = vsel %vm700_vm10, %v697_v45, %v1668_v30 }
 0x19c   : > { %808 = vmatpush1.bf16.msra.mxu1 %v773_v41  ;;  %v718_v63 = vmul.f32 %v711_v51, %v701_v58  ;;  %v719_v33 = vmul.f32 %v715_v52, %v703_v36 }
 0x19d   : > { %v775_v48 = vpack.c.bf16 %v652_v23, %v650_v34  ;;  %v665_v49 = vpop.permute.xlu1 %664  ;;  %v776_v31 = vpack.c.bf16 %v653_v39, %v651_v16  ;;  %v1850_v16 = vld [vmem:[%s2026_s8] sm:$0xff] }
 0x19e   : > { %v668_v53 = vsel %vm666_vm9, %v1628_v50, %v665_v49  ;;  %v670_v54 = vsel %vm666_vm9, %v665_v49, %v1628_v50  ;;  %v1380_v20 = vcombine.high %v1850_v16, %v1850_v16  ;;  %v1232_v23 = vld [vmem:[%s2027_s9] sm:$0xff] }
 0x19f   : > { %v686_v56 = vmul.f32 %v677_v28, %v668_v53  ;;  %v687_v57 = vmul.f32 %v681_v29, %v670_v54  ;;  %809 = vmatprep.subr.bf16.mxu1 %v776_v31 }
 0x1a0   : > { %810 = vmatpush1.bf16.msra.mxu1 %v775_v48 }
 0x1a1   : > { %v777_v59 = vpack.c.bf16 %v686_v56, %v684_v40  ;;  %v699_v60 = vpop.permute.xlu1 %698  ;;  %v778_v61 = vpack.c.bf16 %v687_v57, %v685_v55  ;;  %v929_v56 = vld [vmem:[%s2019_s1] ss:$8 sm:$0x3] }
 0x1a2   : > { %v702_v50 = vsel %vm700_vm10, %v1692_v2, %v699_v60  ;;  %v704_v62 = vsel %vm700_vm10, %v699_v60, %v1692_v2  ;;  %v934_v58 = vrot.slane %v929_v56, %v1620_v46  ;;  %v938_v36 = vrot.slane %v929_v56, %v1622_v47  ;;  %v1372_v60 = vld [vmem:[%s2019_s1 + $0x1] ss:$8 sm:$0x3] }
 0x1a3   : > { %v720_v0 = vmul.f32 %v711_v51, %v702_v50  ;;  %v721_v1 = vmul.f32 %v715_v52, %v704_v62  ;;  %811 = vmatprep.subr.bf16.mxu1 %v778_v61 }
 0x1a4   : > { %812 = vmatpush1.bf16.msra.mxu1 %v777_v59 }
 0x1a5   : > { %v779_v5 = vpack.c.bf16 %v720_v0, %v718_v63  ;;  %v780_v30 = vpack.c.bf16 %v721_v1, %v719_v33  ;;  %v966_v0 = vrot.slane %v1372_v60, %v1620_v46  ;;  %v970_v1 = vrot.slane %v1372_v60, %v1622_v47 }
 0x1a7   : > { %813 = vmatprep.subr.bf16.mxu1 %v780_v30 }
 0x1a8   : > { %814 = vmatpush1.bf16.msra.mxu1 %v779_v5 }
 0x1aa   : > { %v785_v2 = vpop.permute.xlu0 %784 }
 0x1ab   : > { %830 = vmatmul.mubr.bf16.vlgmr.msra.gmra.mrb[4].mxu1 %v1367_v6 }
 0x1ae   : > { %v860_v18 = vpop.permute.xlu0 %859 }
 0x217   : > { %v855_v21 = vpop.permute.xlu1 %854 }
 0x27e   : > { %v831_v7 = vpop.f32.mrb[4].mxu1 }
 0x27f   : > { %v832_v8 = vadd.f32 %v831_v7, %v785_v2  ;;  %v833_v9 = vpop.f32.mrb[5].mxu1  ;;  %v1373_v7 = vld [vmem:[%s2019_s1 + $0x2] ss:$8 sm:$0x3] }
 0x280   : > { %v834_v10 = vadd.f32 %v833_v9, %v785_v2  ;;  %v835_v11 = vpop.f32.mrb[6].mxu1 }
 0x281   : > { %v838_v12 = vmax.f32 %v832_v8, 0.0  ;;  %v836_v13 = vpop.f32.mrb[7].mxu1 }
 0x282   : > { %v839_v35 = vmax.f32 %v834_v10, 0.0 }
 0x283   : > { %v846_v25 = vpack.c.bf16 %v838_v12, %v1505_v4 }
 0x284   : > { %v847_v14 = vpack.c.bf16 %v839_v35, %v1503_v3 }
 0x286   : > { %870 = vmatprep.subr.bf16.mxu0 %v847_v14  ;;  %v998_v14 = vrot.slane %v1373_v7, %v1620_v46 }
 0x287   : > { %871 = vmatpush1.bf16.msra.mxu0 %v846_v25  ;;  %v1002_v25 = vrot.slane %v1373_v7, %v1622_v47 }
 0x28a   : > { %1371 = vmatmul.mubr.msk.bf16.vlgmr.msra.gmra.mrb[0].mxu0 %vm793_vm2, %v1406_v15 }
 0x28b   : > { %1381 = vmatprep.mubr.msk.bf16.mxu0 %vm793_vm2, %v1380_v20 }
 0x35d   : > { %v904_v22 = vpop.f32.mrb[0].mxu0 }
 0x35e   : > { %v905_v24 = vadd.f32 %v904_v22, %v855_v21  ;;  %v906_v17 = vpop.f32.mrb[1].mxu0 }
 0x35f   : > { %v907_v19 = vadd.f32 %v906_v17, %v855_v21  ;;  %v908_v41 = vpop.f32.mrb[2].mxu0 }
 0x360   : > { %v1779_v26 = vmax.f32 %v905_v24, 0.0  ;;  %v909_v3 = vadd.f32 %v908_v41, %v860_v18  ;;  %v910_v27 = vpop.f32.mrb[3].mxu0 }
 0x361   : > { %v911_v4 = vadd.f32 %v910_v27, %v860_v18  ;;  %v1785_v29 = vmax.f32 %v907_v19, 0.0  ;;  %v1374_v18 = vld [vmem:[%s2019_s1 + $0x3] ss:$8 sm:$0x3] }
 0x362   : > { %v1781_v28 = vmax.f32 %v909_v3, 0.0  ;;  %917 = vrot.lane.b32.xlu1 %v1779_v26, %s1419_s27 }
 0x363   : > { %v1787_v32 = vmax.f32 %v911_v4, 0.0 }
 0x364   : > { %919 = vrot.lane.b32.xlu0 %v1781_v28, %s1419_s27  ;;  %v1222_v37 = vpack.c.bf16 %v1781_v28, %v1779_v26 }
 0x365   : > { %v1223_v34 = vpack.c.bf16 %v1787_v32, %v1785_v29 }
 0x366   : > { %949 = vrot.lane.b32.xlu1 %v1779_v26, %s1418_s26 }
 0x368   : > { %951 = vrot.lane.b32.xlu0 %v1781_v28, %s1418_s26 }
 0x36a   : > { %981 = vrot.lane.b32.xlu1 %v1779_v26, %s1420_s28 }
 0x36c   : > { %983 = vrot.lane.b32.xlu0 %v1781_v28, %s1420_s28 }
 0x36e   : > { %1013 = vrot.lane.b32.xlu1 %v1779_v26, %s1421_s29 }
 0x370   : > { %1015 = vrot.lane.b32.xlu0 %v1781_v28, %s1421_s29 }
 0x372   : > { %1049 = vrot.lane.b32.xlu1 %v1779_v26, %s1422_s30 }
 0x374   : > { %1051 = vrot.lane.b32.xlu0 %v1781_v28, %s1422_s30 }
 0x376   : > { %1081 = vrot.lane.b32.xlu1 %v1779_v26, %s1423_s11 }
 0x378   : > { %1083 = vrot.lane.b32.xlu0 %v1781_v28, %s1423_s11 }
 0x37a   : > { %1113 = vrot.lane.b32.xlu1 %v1779_v26, %s1424_s12 }
 0x37c   : > { %1115 = vrot.lane.b32.xlu0 %v1781_v28, %s1424_s12 }
 0x37e   : > { %921 = vrot.lane.b32.xlu1 %v1785_v29, %s1419_s27 }
 0x380   : > { %923 = vrot.lane.b32.xlu0 %v1787_v32, %s1419_s27 }
 0x382   : > { %953 = vrot.lane.b32.xlu1 %v1785_v29, %s1418_s26 }
 0x384   : > { %955 = vrot.lane.b32.xlu0 %v1787_v32, %s1418_s26 }
 0x386   : > { %985 = vrot.lane.b32.xlu1 %v1785_v29, %s1420_s28 }
 0x388   : > { %987 = vrot.lane.b32.xlu0 %v1787_v32, %s1420_s28 }
 0x38a   : > { %1017 = vrot.lane.b32.xlu1 %v1785_v29, %s1421_s29 }
 0x38c   : > { %1019 = vrot.lane.b32.xlu0 %v1787_v32, %s1421_s29 }
 0x38e   : > { %1145 = vrot.lane.b32.xlu1 %v1779_v26, %s1425_s14 }
 0x390   : > { %1147 = vrot.lane.b32.xlu0 %v1781_v28, %s1425_s14 }
 0x392   : > { %1053 = vrot.lane.b32.xlu1 %v1785_v29, %s1422_s30 }
 0x394   : > { %1055 = vrot.lane.b32.xlu0 %v1787_v32, %s1422_s30 }
 0x396   : > { %1085 = vrot.lane.b32.xlu1 %v1785_v29, %s1423_s11 }
 0x398   : > { %1087 = vrot.lane.b32.xlu0 %v1787_v32, %s1423_s11  ;;  %s361_s11 = scalar_lea.vmem %s2028_s10, %s1354_s20 }
 0x39a   : > { %1117 = vrot.lane.b32.xlu1 %v1785_v29, %s1424_s12 }
 0x39c   : > { %1119 = vrot.lane.b32.xlu0 %v1787_v32, %s1424_s12 }
 0x39e   : > { %1149 = vrot.lane.b32.xlu1 %v1785_v29, %s1425_s14  ;;  %v1377_v29 = vld [vmem:[%s2019_s1 + $0x7] ss:$8 sm:$0x3] }
 0x3a0   : > { %1151 = vrot.lane.b32.xlu0 %v1787_v32, %s1425_s14 }
 0x3a2   : > { %1235 = vperm.xlu1 %1402, %v1232_v23  }
 0x3d4   : > { %v918_v39 = vpop.permute.xlu1 %917 }
 0x3d6   : > { %v920_v42 = vpop.permute.xlu0 %919 }
 0x3d8   : > { %v950_v44 = vpop.permute.xlu1 %949 }
 0x3da   : > { %v952_v45 = vpop.permute.xlu0 %951 }
 0x3dc   : > { %v982_v48 = vpop.permute.xlu1 %981 }
 0x3de   : > { %v984_v49 = vpop.permute.xlu0 %983 }
 0x3e0   : > { %v1014_v31 = vpop.permute.xlu1 %1013 }
 0x3e2   : > { %v1866_v51 = vpop.permute.xlu0 %1015 }
 0x3e4   : > { %v1868_v52 = vpop.permute.xlu1 %1049 }
 0x3e6   : > { %v1870_v53 = vpop.permute.xlu0 %1051 }
 0x3e8   : > { %v1872_v54 = vpop.permute.xlu1 %1081 }
 0x3ea   : > { %v1874_v40 = vpop.permute.xlu0 %1083 }
 0x3ec   : > { %v1876_v55 = vpop.permute.xlu1 %1113 }
 0x3ee   : > { %v1881_v57 = vpop.permute.xlu0 %1115 }
 0x3f0   : > { %v922_v59 = vpop.permute.xlu1 %921 }
 0x3f1   : > { %v925_v61 = vsel %vm459_vm3, %v918_v39, %v922_v59  ;;  %v927_v50 = vsel %vm459_vm3, %v922_v59, %v918_v39  ;;  %v1030_v39 = vrot.slane %v1374_v18, %v1620_v46 }
 0x3f2   : > { %v924_v62 = vpop.permute.xlu0 %923  ;;  %v941_v5 = vmul.f32 %v934_v58, %v927_v50  ;;  %v942_v30 = vmul.f32 %v938_v36, %v925_v61 }
 0x3f3   : > { %v926_v63 = vsel %vm459_vm3, %v920_v42, %v924_v62  ;;  %v928_v33 = vsel %vm459_vm3, %v924_v62, %v920_v42  ;;  %v1034_v42 = vrot.slane %v1374_v18, %v1622_v47 }
 0x3f4   : > { %v943_v6 = vmul.f32 %v934_v58, %v928_v33  ;;  %v944_v38 = vmul.f32 %v938_v36, %v926_v63  ;;  %v954_v2 = vpop.permute.xlu1 %953 }
 0x3f5   : > { %v957_v8 = vsel %vm492_vm4, %v950_v44, %v954_v2  ;;  %v959_v9 = vsel %vm492_vm4, %v954_v2, %v950_v44 }
 0x3f6   : > { %v1214_v10 = vpack.c.bf16 %v943_v6, %v941_v5  ;;  %v956_v11 = vpop.permute.xlu0 %955  ;;  %v1215_v12 = vpack.c.bf16 %v944_v38, %v942_v30  ;;  %v973_v15 = vmul.f32 %v966_v0, %v959_v9  ;;  %v974_v21 = vmul.f32 %v970_v1, %v957_v8  ;;  %v1376_v8 = vld [vmem:[%s2019_s1 + $0x6] ss:$8 sm:$0x3] }
 0x3f7   : > { %v958_v13 = vsel %vm492_vm4, %v952_v45, %v956_v11  ;;  %v960_v35 = vsel %vm492_vm4, %v956_v11, %v952_v45 }
 0x3f8   : > { %v975_v22 = vmul.f32 %v966_v0, %v960_v35  ;;  %v976_v24 = vmul.f32 %v970_v1, %v958_v13  ;;  %1247 = vmatprep.subr.bf16.mxu0 %v1215_v12  ;;  %v986_v17 = vpop.permute.xlu1 %985  ;;  %v1098_v35 = vrot.slane %v1376_v8, %v1620_v46 }
 0x3f9   : > { %v989_v19 = vsel %vm526_vm5, %v982_v48, %v986_v17  ;;  %v991_v41 = vsel %vm526_vm5, %v986_v17, %v982_v48  ;;  %1248 = vmatpush1.bf16.msra.mxu0 %v1214_v10 }
 0x3fa   : > { %v1216_v3 = vpack.c.bf16 %v975_v22, %v973_v15  ;;  %v988_v27 = vpop.permute.xlu0 %987  ;;  %v1217_v4 = vpack.c.bf16 %v976_v24, %v974_v21  ;;  %v1005_v44 = vmul.f32 %v998_v14, %v991_v41  ;;  %v1006_v45 = vmul.f32 %v1002_v25, %v989_v19 }
 0x3fb   : > { %v990_v20 = vsel %vm526_vm5, %v984_v49, %v988_v27  ;;  %v992_v23 = vsel %vm526_vm5, %v988_v27, %v984_v49  ;;  %v1130_v41 = vrot.slane %v1377_v29, %v1620_v46 }
 0x3fc   : > { %v1007_v56 = vmul.f32 %v998_v14, %v992_v23  ;;  %v1008_v58 = vmul.f32 %v1002_v25, %v990_v20  ;;  %1249 = vmatprep.subr.bf16.mxu0 %v1217_v4  ;;  %v1018_v48 = vpop.permute.xlu1 %1017  ;;  %v1102_v14 = vrot.slane %v1376_v8, %v1622_v47 }
 0x3fd   : > { %v1021_v36 = vsel %vm560_vm6, %v1014_v31, %v1018_v48  ;;  %v1023_v59 = vsel %vm560_vm6, %v1018_v48, %v1014_v31  ;;  %1250 = vmatpush1.bf16.msra.mxu0 %v1216_v3  ;;  %v1375_v31 = vld [vmem:[%s2019_s1 + $0x5] ss:$8 sm:$0x3]  ;;  %v1134_v3 = vrot.slane %v1377_v29, %v1622_v47 }
 0x3fe   : > { %v1218_v60 = vpack.c.bf16 %v1007_v56, %v1005_v44  ;;  %v1020_v61 = vpop.permute.xlu0 %1019  ;;  %v1219_v49 = vpack.c.bf16 %v1008_v58, %v1006_v45  ;;  %v1037_v63 = vmul.f32 %v1030_v39, %v1023_v59  ;;  %v1038_v33 = vmul.f32 %v1034_v42, %v1021_v36 }
 0x3ff   : > { %v1022_v50 = vsel %vm560_vm6, %v1866_v51, %v1020_v61  ;;  %v1024_v62 = vsel %vm560_vm6, %v1020_v61, %v1866_v51  ;;  %v1066_v2 = vrot.slane %v1375_v31, %v1620_v46  ;;  %v1070_v51 = vrot.slane %v1375_v31, %v1622_v47 }
 0x400   : > { %v1039_v0 = vmul.f32 %v1030_v39, %v1024_v62  ;;  %v1040_v1 = vmul.f32 %v1034_v42, %v1022_v50  ;;  %1251 = vmatprep.subr.bf16.mxu0 %v1219_v49  ;;  %v1146_v5 = vpop.permute.xlu1 %1145 }
 0x401   : > { %1252 = vmatpush1.bf16.msra.mxu0 %v1218_v60 }
 0x402   : > { %v1220_v30 = vpack.c.bf16 %v1039_v0, %v1037_v63  ;;  %v1937_v6 = vpop.permute.xlu0 %1147  ;;  %v1221_v38 = vpack.c.bf16 %v1040_v1, %v1038_v33 }
 0x404   : > { %1253 = vmatprep.subr.bf16.mxu0 %v1221_v38  ;;  %v1054_v7 = vpop.permute.xlu1 %1053 }
 0x405   : > { %v1057_v9 = vsel %vm598_vm7, %v1868_v52, %v1054_v7  ;;  %v1059_v10 = vsel %vm598_vm7, %v1054_v7, %v1868_v52  ;;  %1254 = vmatpush1.bf16.msra.mxu0 %v1220_v30  ;;  %v1379_v30 = vcombine.low %v1850_v16, %v1850_v16 }
 0x406   : > { %v1056_v11 = vpop.permute.xlu0 %1055  ;;  %1255 = vmatprep.subr.bf16.mxu0 %v1223_v34  ;;  %v1073_v25 = vmul.f32 %v1066_v2, %v1057_v9  ;;  %v1074_v52 = vmul.f32 %v1070_v51, %v1059_v10 }
 0x407   : > { %v1058_v12 = vsel %vm598_vm7, %v1870_v53, %v1056_v11  ;;  %v1060_v13 = vsel %vm598_vm7, %v1056_v11, %v1870_v53 }
 0x408   : > { %v1075_v15 = vmul.f32 %v1066_v2, %v1058_v12  ;;  %v1076_v21 = vmul.f32 %v1070_v51, %v1060_v13  ;;  %v1086_v22 = vpop.permute.xlu1 %1085 }
 0x409   : > { %v1089_v32 = vsel %vm632_vm8, %v1872_v54, %v1086_v22  ;;  %v1091_v34 = vsel %vm632_vm8, %v1086_v22, %v1872_v54  ;;  %1256 = vmatpush1.bf16.msra.mxu0 %v1222_v37  ;;  %v1378_v37 = vld [vmem:[%s2019_s1 + $0x10] ss:$8 sm:$0x3] }
 0x40a   : > { %v1224_v53 = vpack.c.bf16 %v1075_v15, %v1073_v25  ;;  %v1088_v24 = vpop.permute.xlu0 %1087  ;;  %v1225_v17 = vpack.c.bf16 %v1076_v21, %v1074_v52  ;;  %v1105_v54 = vmul.f32 %v1098_v35, %v1089_v32  ;;  %v1106_v27 = vmul.f32 %v1102_v14, %v1091_v34 }
 0x40b   : > { %v1090_v18 = vsel %vm632_vm8, %v1874_v40, %v1088_v24  ;;  %v1092_v19 = vsel %vm632_vm8, %v1088_v24, %v1874_v40  ;;  %v1162_v56 = vrot.slane %v1378_v37, %v1620_v46  ;;  %v1166_v58 = vrot.slane %v1378_v37, %v1622_v47 }
 0x40c   : > { %v1107_v4 = vmul.f32 %v1098_v35, %v1090_v18  ;;  %v1108_v26 = vmul.f32 %v1102_v14, %v1092_v19  ;;  %v1118_v28 = vpop.permute.xlu1 %1117  ;;  %1257 = vmatprep.subr.bf16.mxu0 %v1225_v17 }
 0x40d   : > { %v1121_v20 = vsel %vm666_vm9, %v1876_v55, %v1118_v28  ;;  %v1123_v40 = vsel %vm666_vm9, %v1118_v28, %v1876_v55  ;;  %1258 = vmatpush1.bf16.msra.mxu0 %v1224_v53 }
 0x40e   : > { %v1226_v23 = vpack.c.bf16 %v1107_v4, %v1105_v54  ;;  %v1120_v39 = vpop.permute.xlu0 %1119  ;;  %v1227_v42 = vpack.c.bf16 %v1108_v26, %v1106_v27  ;;  %v1137_v48 = vmul.f32 %v1130_v41, %v1121_v20  ;;  %v1138_v36 = vmul.f32 %v1134_v3, %v1123_v40 }
 0x40f   : > { %v1122_v44 = vsel %vm666_vm9, %v1881_v57, %v1120_v39  ;;  %v1124_v45 = vsel %vm666_vm9, %v1120_v39, %v1881_v57 }
 0x410   : > { %v1139_v59 = vmul.f32 %v1130_v41, %v1122_v44  ;;  %v1140_v55 = vmul.f32 %v1134_v3, %v1124_v45  ;;  %v1150_v60 = vpop.permute.xlu1 %1149  ;;  %1259 = vmatprep.subr.bf16.mxu0 %v1227_v42 }
 0x411   : > { %v1153_v61 = vsel %vm700_vm10, %v1146_v5, %v1150_v60  ;;  %v1155_v49 = vsel %vm700_vm10, %v1150_v60, %v1146_v5  ;;  %1260 = vmatpush1.bf16.msra.mxu0 %v1226_v23 }
 0x412   : > { %v1228_v50 = vpack.c.bf16 %v1139_v59, %v1137_v48  ;;  %v1152_v62 = vpop.permute.xlu0 %1151  ;;  %v1229_v57 = vpack.c.bf16 %v1140_v55, %v1138_v36  ;;  %v1169_v63 = vmul.f32 %v1162_v56, %v1153_v61  ;;  %v1170_v33 = vmul.f32 %v1166_v58, %v1155_v49 }
 0x413   : > { %v1154_v46 = vsel %vm700_vm10, %v1937_v6, %v1152_v62  ;;  %v1156_v47 = vsel %vm700_vm10, %v1152_v62, %v1937_v6 }
 0x414   : > { %v1171_v0 = vmul.f32 %v1162_v56, %v1154_v46  ;;  %v1172_v1 = vmul.f32 %v1166_v58, %v1156_v47  ;;  %1261 = vmatprep.subr.bf16.mxu0 %v1229_v57 }
 0x415   : > { %1262 = vmatpush1.bf16.msra.mxu0 %v1228_v50 }
 0x416   : > { %v1230_v5 = vpack.c.bf16 %v1171_v0, %v1169_v63  ;;  %v1231_v31 = vpack.c.bf16 %v1172_v1, %v1170_v33 }
 0x418   : > { %1263 = vmatprep.subr.bf16.mxu0 %v1231_v31 }
 0x419   : > { %1264 = vmatpush1.bf16.msra.mxu0 %v1230_v5 }
 0x41c   : > { %1280 = vmatmul.mubr.bf16.vlgmr.msra.gmra.mrb[4].mxu0 %v1379_v30 }
 0x421   : > { %v1236_v38 = vpop.permute.xlu1 %1235 }
 0x4ef   : > { %v1281_v2 = vpop.f32.mrb[4].mxu0 }
 0x4f0   : > { %v1282_v51 = vadd.f32 %v1281_v2, %v1236_v38  ;;  %v1283_v43 = vpop.f32.mrb[5].mxu0 }
 0x4f1   : > { %v1284_v6 = vadd.f32 %v1283_v43, %v1236_v38  ;;  %v1285_v7 = vpop.f32.mrb[6].mxu0 }
 0x4f2   : > { %v1288_v8 = vmax.f32 %v1282_v51, 0.0  ;;  %v1286_v9 = vpop.f32.mrb[7].mxu0 }
 0x4f3   : > { %v1289_v10 = vmax.f32 %v1284_v6, 0.0 }
 0x4f4   : > { %1290 = vst [vmem:[%s361_s11] sm:$0xff] %v1288_v8 }
 0x4f5   : > { %1291 = vst [vmem:[%s361_s11 + $0x8] sm:$0xff] %v1289_v10 }
 0x4f6 PF: > { %s20_s13 = sadd.s32 1, %s1415_s13  }
 0x4f7   : > { %p17_p4 = scmp.ge.s32.totalorder %s20_s13, 4  }
 0x4f9   :  { %19 = sbr.rel (!%p17_p4) target bundleno = 1 (0x1), region = 97 }

</bundles_post_ra>
